<compile_context>
chip_gen: v7x
topology: tpu7x:2x2x1
jax: 0.10.0
libtpu: 0.0.40
codegen_flags: <defaults>
</compile_context>

<pallas_src>
import functools
import math

import jax
import jax.numpy as jnp
from jax.experimental import pallas as pl
from jax.experimental.pallas import tpu as pltpu

IGNORE_INDEX = 100000
_LANE = 128
_ROW_ALIGN = 16  # sublane multiple that works for both f32 (8) and bf16 (16)


def _nmt_criterion_kernel(n_rows_ref, labels_ref, scores_ref, part_ref, *,
                          label_smoothing: float, ignore_index: int):
    """One grid step over a (tm, K) logits tile.

    Per row r (x = logits, lse = logsumexp(x), xl = x[label]):
      smoothing > 0 (KLDivLoss, sum):
          loss_r = C + lse_r - sum_k coef_k * x_rk
          with coef_k = conf at the label column, low elsewhere,
               low  = smoothing / (K-1), conf = 1 - smoothing,
               C    = (K-1) * low * log(low) + conf * log(conf)
      smoothing == 0 (NLLLoss, sum, ignore_index):
          loss_r = valid_r * (lse_r - xl_r)
    Rows beyond n_rows (ragged last block) are masked to zero.
    """
    i = pl.program_id(0)
    x = scores_ref[...]                                      # (tm, K), native dtype
    tm, k = x.shape
    labels = labels_ref[...]                                 # (tm, 1) int32

    # Row-wise log-sum-exp (upcast only inside the reduction expressions).
    m = jnp.max(x, axis=-1, keepdims=True)                                 # (tm,1)
    e = jnp.exp((x - m).astype(jnp.float32))                               # (tm,K) f32
    lse = m.astype(jnp.float32) + jnp.log(
        jnp.sum(e, axis=-1, keepdims=True))                                # (tm,1)

    col = jax.lax.broadcasted_iota(jnp.int32, (tm, k), 1)
    row = i * tm + jax.lax.broadcasted_iota(jnp.int32, (tm, 1), 0)
    row_ok = row < n_rows_ref[0]     # rows past N (ragged last block) contribute 0

    if label_smoothing > 0.0:
        conf = 1.0 - label_smoothing
        low = label_smoothing / (k - 1)
        c0 = (k - 1) * low * math.log(low) + conf * math.log(conf)
        # Fused weighted row-sum: coef = conf at the label column, low elsewhere.
        coef = jnp.where(col == labels, jnp.float32(conf), jnp.float32(low))
        weighted = jnp.sum(coef * x.astype(jnp.float32),
                           axis=-1, keepdims=True)                         # (tm,1)
        # NOTE: like the original PyTorch module, padding tokens
        # (label == ignore_index) are NOT excluded on the smoothing path.
        contrib = jnp.where(row_ok, c0 + lse - weighted, 0.0)
    else:
        x_label = jnp.sum(jnp.where(col == labels, x.astype(jnp.float32), 0.0),
                          axis=-1, keepdims=True)                          # (tm,1)
        valid = (labels != ignore_index) & row_ok
        contrib = jnp.where(valid, lse - x_label, 0.0)

    partial = jnp.sum(contrib)                                             # scalar

    # Lane-dense (8,128) output block per grid step; only [0,0] is non-zero.
    r8 = jax.lax.broadcasted_iota(jnp.int32, (8, _LANE), 0)
    c128 = jax.lax.broadcasted_iota(jnp.int32, (8, _LANE), 1)
    part_ref[...] = jnp.where((r8 == 0) & (c128 == 0), partial, 0.0)


def _tpu_generation():
    try:
        kind = jax.devices()[0].device_kind.lower()
    except Exception:
        return None
    for g in (7, 6, 5, 4):
        if f"v{g}" in kind:
            return g
    return None


def _per_row_vmem_bytes(k, itemsize):
    """VMEM working set per logits row inside one grid step."""
    k_lanes = ((k + _LANE - 1) // _LANE) * _LANE
    return (2 * k_lanes * itemsize      # double-buffered logits tile
            + 2 * _LANE * 4             # (tm,1) int32 labels, lane-padded, x2 buffers
            + 3 * k_lanes * 4)          # f32 in-kernel intermediates (exp / coef / sums)


def _choose_tm(n, k, itemsize, target_block_bytes, vmem_budget_bytes,
               max_tm=8192, row_align=_ROW_ALIGN):
    """Row tile: ~target_block_bytes of logits per block, capped by the VMEM budget."""
    k_lanes = ((k + _LANE - 1) // _LANE) * _LANE
    per_row = _per_row_vmem_bytes(k, itemsize)
    tm = max(1, target_block_bytes // (k_lanes * itemsize))
    tm = min(tm, max(1, vmem_budget_bytes // per_row), max_tm)
    tm = max(row_align, (tm // row_align) * row_align)
    # Never allocate more rows than one aligned copy of the input.
    tm = min(tm, ((n + row_align - 1) // row_align) * row_align)
    return int(tm)


def nmt_criterion(dec_outs, labels, label_smoothing=0.0, tm=None):
    """Pallas NMTCritierion forward. dec_outs: (..., K); labels: matching (...)."""
    k = dec_outs.shape[-1]
    if label_smoothing > 0.0:
        if not (0.0 < label_smoothing < 1.0):
            raise ValueError("label_smoothing must be in (0, 1) on the smoothing path")
        if k < 2:
            raise ValueError("label smoothing requires at least 2 classes")

    dec2d = dec_outs.reshape(-1, k)
    n = dec2d.shape[0]
    labels2d = labels.reshape(-1)[:, None].astype(jnp.int32)

    # Per-generation tile target + VMEM budgets (block bytes / working-set budget /
    # scoped-VMEM default / ceiling for an explicit vmem_limit request).
    gen = _tpu_generation()
    if gen is not None and gen >= 7:      # v7x: 64 MiB VMEM per TC, 3.2 TB/s HBM
        target_block, vmem_budget, scoped_default, vmem_ceiling = (
            8 << 20, 40 << 20, 32 << 20, 48 << 20)
    elif gen == 6:                        # v6e: 128 MiB VMEM, 32 MiB scoped default
        target_block, vmem_budget, scoped_default, vmem_ceiling = (
            4 << 20, 24 << 20, 32 << 20, 64 << 20)
    else:                                 # v5e / unknown: 16 MiB scoped default
        target_block, vmem_budget, scoped_default, vmem_ceiling = (
            2 << 20, 12 << 20, 16 << 20, 32 << 20)

    if tm is None:
        tm = _choose_tm(n, k, dec2d.dtype.itemsize, target_block, vmem_budget)
    grid = pl.cdiv(n, tm)
    # NOTE: no jnp.pad of the logits/labels — the ragged last block is allowed
    # and out-of-range rows are masked inside the kernel (row < n_rows).

    kernel = functools.partial(
        _nmt_criterion_kernel,
        label_smoothing=float(label_smoothing),
        ignore_index=IGNORE_INDEX)

    cp_kwargs = dict(dimension_semantics=("parallel",))
    vmem_need = tm * _per_row_vmem_bytes(k, dec2d.dtype.itemsize) + (1 << 20)
    if vmem_need > scoped_default:
        cp_kwargs["vmem_limit_bytes"] = int(min(vmem_need + (2 << 20), vmem_ceiling))
    # TODO(synk): very large K (> ~128K) would additionally need class-dim
    # tiling (two-pass logsumexp); single full-K blocks are used here.

    n_rows = jnp.full((1,), n, dtype=jnp.int32)   # SMEM scalar (avoids N-specific bake-in)

    partials = pl.pallas_call(
        kernel,
        out_shape=jax.ShapeDtypeStruct((grid * 8, _LANE), jnp.float32),
        grid_spec=pltpu.PrefetchScalarGridSpec(
            num_scalar_prefetch=1,
            grid=(grid,),
            in_specs=[
                pl.BlockSpec((tm, 1), lambda i, n_ref: (i, 0)),   # labels tile
                pl.BlockSpec((tm, k), lambda i, n_ref: (i, 0)),   # logits tile
            ],
            out_specs=pl.BlockSpec((8, _LANE), lambda i, n_ref: (i, 0)),
        ),
        compiler_params=pltpu.CompilerParams(**cp_kwargs),
    )(n_rows, labels2d, dec2d)
    return jnp.sum(partials)


def _reference(dec_outs, labels, label_smoothing):
    logp = jax.nn.log_softmax(dec_outs.astype(jnp.float32), axis=-1)
    n, k = dec_outs.shape
    if label_smoothing > 0.0:
        conf = 1.0 - label_smoothing
        low = label_smoothing / (k - 1)
        onehot = jax.nn.one_hot(labels, k, dtype=jnp.float32)
        target = onehot * conf + (1.0 - onehot) * low
        return jnp.sum(target * (jnp.log(target) - logp))
    valid = labels != IGNORE_INDEX
    safe = jnp.where(valid, labels, 0)
    picked = jnp.take_along_axis(logp, safe[:, None], axis=-1)[:, 0]
    return -jnp.sum(jnp.where(valid, picked, 0.0))


if __name__ == "__main__":
    # Small shapes consistent with the module: N flattened tokens, K classes.
    # N deliberately not a multiple of the row tile to exercise the ragged-last-block mask.
    N, K = 50, 128
    key = jax.random.PRNGKey(0)
    k1, k2 = jax.random.split(key)
    dec_outs = jax.random.normal(k1, (N, K), dtype=jnp.float32)
    labels = jax.random.randint(k2, (N,), 0, K, dtype=jnp.int32)
    # Add a couple of padding tokens to exercise ignore_index on the NLL path.
    labels_nll = labels.at[3].set(IGNORE_INDEX).at[17].set(IGNORE_INDEX)

    ok = True
    for ls, lab in ((0.1, labels), (0.0, labels_nll)):
        loss = nmt_criterion(dec_outs, lab, label_smoothing=ls)
        jax.block_until_ready(loss)
        ref = _reference(dec_outs, lab, ls)
        if not jnp.allclose(loss, ref, rtol=1e-3, atol=1e-3):
            ok = False
            print(f"mismatch at label_smoothing={ls}: {loss} vs {ref}")

    if ok:
        print("KERNEL_OK")
</pallas_src>

<mosaic_0001>
module attributes {stable_mosaic.version = 11 : i64} {
  func.func @_nmt_criterion_kernel(%arg0: i32, %arg1: memref<1xi32, #tpu.memory_space<smem>>, %arg2: memref<64x1xi32, #tpu.memory_space<vmem>>, %arg3: memref<64x128xf32, #tpu.memory_space<vmem>>, %arg4: memref<8x128xf32, #tpu.memory_space<vmem>>) attributes {dimension_semantics = [#tpu.dimension_semantics<parallel>], iteration_bounds = array<i64: 1>, scalar_prefetch = 1 : i64, scratch_operands = 0 : i64, tpu.core_type = #tpu.core_type<tc>, window_params = [{transform_indices = @transform_0, window_bounds = array<i64: 64, 1>}, {transform_indices = @transform_1, window_bounds = array<i64: 64, 128>}, {transform_indices = @transform_2, window_bounds = array<i64: 8, 128>}]} {
    %c0 = arith.constant 0 : index
    %c0_0 = arith.constant 0 : index
    %0 = vector.load %arg3[%c0, %c0_0] : memref<64x128xf32, #tpu.memory_space<vmem>>, vector<64x128xf32>
    %c0_1 = arith.constant 0 : index
    %c0_2 = arith.constant 0 : index
    %1 = vector.load %arg2[%c0_1, %c0_2] : memref<64x1xi32, #tpu.memory_space<vmem>>, vector<64x1xi32>
    %cst = arith.constant dense<0xFF800000> : vector<64xf32>
    %2 = vector.multi_reduction <maximumf>, %0, %cst [1] : vector<64x128xf32> to vector<64xf32>
    %3 = vector.shape_cast %2 : vector<64xf32> to vector<64x1xf32>
    %4 = vector.broadcast %3 : vector<64x1xf32> to vector<64x128xf32>
    %5 = arith.subf %0, %4 : vector<64x128xf32>
    %6 = math.exp %5 : vector<64x128xf32>
    %cst_3 = arith.constant dense<0.000000e+00> : vector<64xf32>
    %7 = vector.multi_reduction <add>, %6, %cst_3 [1] : vector<64x128xf32> to vector<64xf32>
    %8 = vector.shape_cast %7 : vector<64xf32> to vector<64x1xf32>
    %9 = math.log %8 : vector<64x1xf32>
    %10 = arith.addf %3, %9 : vector<64x1xf32>
    %11 = tpu.iota {dimensions = array<i32: 1>} : vector<64x128xi32>
    %c64_i32 = arith.constant 64 : i32
    %12 = arith.muli %arg0, %c64_i32 : i32
    %13 = tpu.iota {dimensions = array<i32: 0>} : vector<64x1xi32>
    %14 = vector.broadcast %12 : i32 to vector<64x1xi32>
    %15 = arith.addi %14, %13 : vector<64x1xi32>
    %c0_4 = arith.constant 0 : index
    %16 = memref.load %arg1[%c0_4] : memref<1xi32, #tpu.memory_space<smem>>
    %17 = vector.broadcast %16 : i32 to vector<64x1xi32>
    %18 = arith.cmpi slt, %15, %17 : vector<64x1xi32>
    %19 = vector.broadcast %1 : vector<64x1xi32> to vector<64x128xi32>
    %20 = arith.cmpi eq, %11, %19 : vector<64x128xi32>
    %cst_5 = arith.constant 0.899999976 : f32
    %cst_6 = arith.constant 7.87401571E-4 : f32
    %21 = vector.broadcast %cst_5 : f32 to vector<64x128xf32>
    %22 = vector.broadcast %cst_6 : f32 to vector<64x128xf32>
    %23 = arith.select %20, %21, %22 : vector<64x128xi1>, vector<64x128xf32>
    %24 = arith.mulf %23, %0 : vector<64x128xf32>
    %cst_7 = arith.constant dense<0.000000e+00> : vector<64xf32>
    %25 = vector.multi_reduction <add>, %24, %cst_7 [1] : vector<64x128xf32> to vector<64xf32>
    %26 = vector.shape_cast %25 : vector<64xf32> to vector<64x1xf32>
    %cst_8 = arith.constant -0.809501707 : f32
    %27 = vector.broadcast %cst_8 : f32 to vector<64x1xf32>
    %28 = arith.addf %27, %10 : vector<64x1xf32>
    %29 = arith.subf %28, %26 : vector<64x1xf32>
    %cst_9 = arith.constant 0.000000e+00 : f32
    %30 = vector.broadcast %cst_9 : f32 to vector<64x1xf32>
    %31 = arith.select %18, %29, %30 : vector<64x1xi1>, vector<64x1xf32>
    %32 = vector.shape_cast %31 : vector<64x1xf32> to vector<1x64x1xf32>
    %cst_10 = arith.constant dense<0.000000e+00> : vector<1xf32>
    %33 = vector.multi_reduction <add>, %32, %cst_10 [1, 2] : vector<1x64x1xf32> to vector<1xf32>
    %34 = vector.shape_cast %33 : vector<1xf32> to vector<1x1x1xf32>
    %35 = vector.extract %34[0, 0, 0] : f32 from vector<1x1x1xf32>
    %36 = tpu.iota {dimensions = array<i32: 0>} : vector<8x128xi32>
    %37 = tpu.iota {dimensions = array<i32: 1>} : vector<8x128xi32>
    %c0_i32 = arith.constant 0 : i32
    %38 = vector.broadcast %c0_i32 : i32 to vector<8x128xi32>
    %39 = arith.cmpi eq, %36, %38 : vector<8x128xi32>
    %c0_i32_11 = arith.constant 0 : i32
    %40 = vector.broadcast %c0_i32_11 : i32 to vector<8x128xi32>
    %41 = arith.cmpi eq, %37, %40 : vector<8x128xi32>
    %42 = arith.andi %39, %41 : vector<8x128xi1>
    %cst_12 = arith.constant 0.000000e+00 : f32
    %43 = vector.broadcast %35 : f32 to vector<8x128xf32>
    %44 = vector.broadcast %cst_12 : f32 to vector<8x128xf32>
    %45 = arith.select %42, %43, %44 : vector<8x128xi1>, vector<8x128xf32>
    %c0_13 = arith.constant 0 : index
    %c0_14 = arith.constant 0 : index
    %46 = vector.load %arg4[%c0_13, %c0_14] : memref<8x128xf32, #tpu.memory_space<vmem>>, vector<8x128xf32>
    tpu.vector_store %arg4[%c0_13, %c0_14], %45 {strides = array<i32>} : memref<8x128xf32, #tpu.memory_space<vmem>>, vector<8x128xf32>,
    return
  }
  func.func @transform_0(%arg0: i32, %arg1: memref<1xi32, #tpu.memory_space<smem>>) -> (i32, i32) {
    %c0_i32 = arith.constant 0 : i32
    %c0_i32_0 = arith.constant 0 : i32
    return %arg0, %c0_i32 : i32, i32
  }
  func.func @transform_1(%arg0: i32, %arg1: memref<1xi32, #tpu.memory_space<smem>>) -> (i32, i32) {
    %c0_i32 = arith.constant 0 : i32
    %c0_i32_0 = arith.constant 0 : i32
    return %arg0, %c0_i32 : i32, i32
  }
  func.func @transform_2(%arg0: i32, %arg1: memref<1xi32, #tpu.memory_space<smem>>) -> (i32, i32) {
    %c0_i32 = arith.constant 0 : i32
    %c0_i32_0 = arith.constant 0 : i32
    return %arg0, %c0_i32 : i32, i32
  }
}

</mosaic_0001>

<bundles_post_ra>
// kernel: tpu_custom_call.1
= control target key start
LH: loop header
LB: loop body
LE: loop exit
PB: predicated region body
PF: predicated region fallthrough
CT: control target
= control target key end

     0   :  { %v337_v4 = vmov 0   ;;  %s545_s0 = inlined_call_operand.<no memory space> [shape: s32[1], index: 0, kind: input, shape index: {}]   ;;  %s546_s1 = inlined_call_operand.vmem [shape: s32[50,1], index: 1, kind: input, shape index: {}]   ;;  %s547_s2 = inlined_call_operand.vmem [shape: f32[50,128], index: 2, kind: input, shape index: {}]   ;;  %s548_s3 = inlined_call_operand.hbm [shape: f32[8,128], index: 3, kind: output, shape index: {}]  }
   0x1   :  { %v363_v0 = vld [vmem:[%s547_s2 + $0x10] sm:$0xff]  ;;  %v368_v1 = vld [vmem:[%s547_s2] sm:$0xff]  ;;  %v375_v2 = vld [vmem:[%s547_s2 + $0x18] sm:$0xff]  ;;  %280 = vset.pattern.permute.xlu1 %v337_v4  ;;  %279 = vset.pattern.permute.xlu0 %v337_v4 }
   0x2   :  { %34 = vmax.xlane.f32.xlu1 %v363_v0  ;;  %30 = vmax.xlane.f32.xlu0 %v368_v1  ;;  %v380_v3 = vld [vmem:[%s547_s2 + $0x8] sm:$0xff] }
   0x6   :  { %36 = vmax.xlane.f32.xlu1 %v375_v2  ;;  %32 = vmax.xlane.f32.xlu0 %v380_v3 }
   0x7   :  { %9 = vsyncpa [#allocation5], 0  ;;  %v387_v5 = vld [vmem:[%s547_s2 + $0x28] sm:$0xff]  ;;  %v392_v6 = vld [vmem:[%s547_s2 + $0x20] sm:$0xff]  ;;  %v110_v43 = vlaneseq  ;;  %v338_v54 = vmov 0.0007874016  }
   0x8   :  { %v399_v7 = vld [vmem:[%s547_s2 + $0x38] sm:$0xff]  ;;  %v404_v8 = vld [vmem:[%s547_s2 + $0x30] sm:$0xff]  ;;  %v23_v9 = vld [vmem:[%s546_s1 + $0x8] sm:$0xff]  ;;  %vm229_vm10 = vcmask 7168  }
   0x9   :  { %v24_v10 = vld [vmem:[%s546_s1 + $0x10] sm:$0xff]  ;;  %v22_v11 = vld [vmem:[%s546_s1] sm:$0xff]  ;;  %v25_v12 = vld [vmem:[%s546_s1 + $0x18] sm:$0xff]  ;;  %v465_v47 = vand.u32 127, %v110_v43 }
   0xa   :  { %40 = vmax.xlane.f32.xlu1 %v387_v5  ;;  %38 = vmax.xlane.f32.xlu0 %v392_v6  ;;  %v26_v13 = vld [vmem:[%s546_s1 + $0x20] sm:$0xff]  ;;  %v27_v14 = vld [vmem:[%s546_s1 + $0x28] sm:$0xff]  ;;  %v28_v15 = vld [vmem:[%s546_s1 + $0x30] sm:$0xff] }
   0xb   :  { %v29_v16 = vld [vmem:[%s546_s1 + $0x38] sm:$0xff] }
   0xe   :  { %44 = vmax.xlane.f32.xlu1 %v399_v7  ;;  %42 = vmax.xlane.f32.xlu0 %v404_v8 }
  0x1f   :  { %145 = vperm.xlu1 %280, %v23_v9  }
  0x23   :  { %148 = vperm.xlu1 %280, %v24_v10  }
  0x24   :  { %142 = vperm.xlu0 %279, %v22_v11  }
  0x27   :  { %151 = vperm.xlu1 %280, %v25_v12  }
  0x2b   :  { %154 = vperm.xlu1 %280, %v26_v13  }
  0x2f   :  { %157 = vperm.xlu1 %280, %v27_v14  }
  0x33   :  { %160 = vperm.xlu1 %280, %v28_v15  }
  0x37   :  { %163 = vperm.xlu1 %280, %v29_v16  }
  0x8f   :  { %v432_v17 = vpop.xlane.xlu1 %34  ;;  %v434_v18 = vpop.xlane.xlu0 %30 }
  0x90   :  { %v46_v19 = vsub.f32 %v368_v1, %v434_v18  ;;  %v48_v25 = vsub.f32 %v363_v0, %v432_v17 }
  0x92   :  { %v54_v20 = vmul.f32 1.442695, %v46_v19  ;;  %v58_v32 = vmul.f32 1.442695, %v48_v25 }
  0x93   :  { %v438_v21 = vpop.xlane.xlu1 %36  ;;  %v440_v22 = vpop.xlane.xlu0 %32 }
  0x94   :  { %v49_v23 = vsub.f32 %v375_v2, %v438_v21  ;;  %v47_v24 = vsub.f32 %v380_v3, %v440_v22  ;;  %281 = vpow2.f32 %v54_v20 }
  0x96   :  { %v60_v26 = vmul.f32 1.442695, %v49_v23  ;;  %v56_v27 = vmul.f32 1.442695, %v47_v24 }
  0x97   :  { %v448_v28 = vpop.xlane.xlu1 %40  ;;  %v450_v29 = vpop.xlane.xlu0 %38 }
  0x98   :  { %283 = vpow2.f32 %v60_v26  ;;  %v51_v30 = vsub.f32 %v387_v5, %v448_v28  ;;  %v50_v31 = vsub.f32 %v392_v6, %v450_v29  ;;  %v484_v26 = vshrl.u32 %v110_v43, 7 }
  0x99   :  { %285 = vpow2.f32 %v56_v27 }
  0x9a   :  { %v64_v33 = vmul.f32 1.442695, %v51_v30  ;;  %v62_v35 = vmul.f32 1.442695, %v50_v31 }
  0x9b   :  { %v456_v34 = vpop.xlane.xlu1 %44  ;;  %v458_v36 = vpop.xlane.xlu0 %42 }
  0x9c   :  { %287 = vpow2.f32 %v64_v33  ;;  %v53_v37 = vsub.f32 %v399_v7, %v456_v34  ;;  %v52_v38 = vsub.f32 %v404_v8, %v458_v36 }
  0x9d   :  { %289 = vpow2.f32 %v58_v32 }
  0x9e   :  { %v68_v39 = vmul.f32 1.442695, %v53_v37  ;;  %v282_v40 = vpop.eup %281  ;;  %291 = vpow2.f32 %v62_v35  ;;  %v66_v42 = vmul.f32 1.442695, %v52_v38  ;;  %v490_v37 = vstv %s545_s0  ;;  %s339_s0 = smov [#allocation4]  }
  0x9f   :  { %v146_v41 = vpop.permute.xlu1 %145  ;;  %70 = vadd.xlane.f32.xlu1 %v282_v40  ;;  %v115_v38 = vadd.s32 8, %v484_v26  ;;  %vm133_vm8 = vcmp.lt.s32.totalorder %v484_v26, %v490_v37  ;;  %s266_s17 = sshll.u32 %s339_s0, 4  ;;  %s267_s17 = int_to_ptr.vmem [resolvable:$true] %s266_s17 }
  0xa0   :  { %293 = vpow2.f32 %v68_v39  ;;  %vm166_vm0 = vcmp.eq.s32.totalorder %v465_v47, %v146_v41  ;;  %s313_s19 = scalar_lea.vmem %s267_s17, 128  ;;  %p318_p1 = scmp.lt.s32.totalorder %s267_s17, %s267_s17 }
  0xa1   :  { %295 = vpow2.f32 %v66_v42  ;;  %v174_v55 = vsel %vm166_vm0, 0.9, %v338_v54  ;;  %vm134_vm9 = vcmp.lt.s32.totalorder %v115_v38, %v490_v37  ;;  %p314_p0 = scmp.ne.s32.totalorder %s267_s17, %s313_s19  ;;  %p319_p2 = scmp.lt.s32.totalorder %s313_s19, %s313_s19 }
  0xa2   :  { %v284_v44 = vpop.eup %283  ;;  %v182_v59 = vmul.f32 %v174_v55, %v380_v3  ;;  %v119_v55 = vadd.s32 40, %v484_v26 }
  0xa3   :  { %v286_v45 = vpop.eup %285  ;;  %v149_v46 = vpop.permute.xlu1 %148  ;;  %76 = vadd.xlane.f32.xlu1 %v284_v44  ;;  %v117_v44 = vadd.s32 24, %v484_v26  ;;  %p320_p3 = por %p319_p2, %p318_p1 }
  0xa4   :  { %72 = vadd.xlane.f32.xlu0 %v286_v45  ;;  %v143_v51 = vpop.permute.xlu0 %142  ;;  %vm167_vm3 = vcmp.eq.s32.totalorder %v465_v47, %v149_v46  ;;  %vm138_vm13 = vcmp.lt.s32.totalorder %v119_v55, %v490_v37 }
  0xa5   :  { %vm165_vm1 = vcmp.eq.s32.totalorder %v465_v47, %v143_v51  ;;  %v175_v4 = vsel %vm167_vm3, 0.9, %v338_v54  ;;  %vm136_vm11 = vcmp.lt.s32.totalorder %v117_v44, %v490_v37  ;;  %p321_p4 = pnand %p320_p3, %p314_p0 }
  0xa6   :  { %v288_v48 = vpop.eup %287  ;;  %v173_v58 = vsel %vm165_vm1, 0.9, %v338_v54  ;;  %v183_v11 = vmul.f32 %v175_v4, %v363_v0  ;;  %vm254_vm1 = vcmp.eq.s32.totalorder %v484_v26, 0 }
  0xa7   :  { %v290_v49 = vpop.eup %289  ;;  %v152_v50 = vpop.permute.xlu1 %151  ;;  %80 = vadd.xlane.f32.xlu1 %v288_v48  ;;  %v181_v62 = vmul.f32 %v173_v58, %v368_v1 }
  0xa8   :  { %74 = vadd.xlane.f32.xlu0 %v290_v49  ;;  %v292_v52 = vpop.eup %291  ;;  %vm168_vm2 = vcmp.eq.s32.totalorder %v465_v47, %v152_v50 }
  0xa9   :  { %v176_v60 = vsel %vm168_vm2, 0.9, %v338_v54  ;;  %vm255_vm2 = vcmp.eq.s32.totalorder %v465_v47, 0 }
  0xaa   :  { %v294_v53 = vpop.eup %293  ;;  %v184_v63 = vmul.f32 %v176_v60, %v375_v2  ;;  %vm256_vm3 = vmand %vm254_vm1, %vm255_vm2 }
  0xab   :  { %v155_v56 = vpop.permute.xlu1 %154  ;;  %84 = vadd.xlane.f32.xlu1 %v294_v53  ;;  %v296_v57 = vpop.eup %295 }
  0xac   :  { %78 = vadd.xlane.f32.xlu0 %v292_v52  ;;  %vm169_vm5 = vcmp.eq.s32.totalorder %v465_v47, %v155_v56  ;;  %v116_v52 = vadd.s32 16, %v484_v26 }
  0xad   :  { %v177_v12 = vsel %vm169_vm5, 0.9, %v338_v54 }
  0xae   :  { %v185_v2 = vmul.f32 %v177_v12, %v392_v6  ;;  %vm135_vm12 = vcmp.lt.s32.totalorder %v116_v52, %v490_v37 }
  0xaf   :  { %v158_v61 = vpop.permute.xlu1 %157  ;;  %191 = vadd.xlane.f32.xlu1 %v182_v59 }
  0xb0   :  { %vm170_vm4 = vcmp.eq.s32.totalorder %v465_v47, %v158_v61  ;;  %82 = vadd.xlane.f32.xlu0 %v296_v57 }
  0xb1   :  { %v178_v9 = vsel %vm170_vm4, 0.9, %v338_v54 }
  0xb2   :  { %v186_v3 = vmul.f32 %v178_v9, %v387_v5 }
  0xb3   :  { %v161_v10 = vpop.permute.xlu1 %160  ;;  %195 = vadd.xlane.f32.xlu1 %v184_v63 }
  0xb4   :  { %189 = vadd.xlane.f32.xlu0 %v181_v62  ;;  %vm171_vm6 = vcmp.eq.s32.totalorder %v465_v47, %v161_v10 }
  0xb5   :  { %v179_v15 = vsel %vm171_vm6, 0.9, %v338_v54 }
  0xb6   :  { %v187_v5 = vmul.f32 %v179_v15, %v404_v8 }
  0xb7   :  { %v164_v13 = vpop.permute.xlu1 %163  ;;  %199 = vadd.xlane.f32.xlu1 %v186_v3 }
  0xb8   :  { %vm172_vm7 = vcmp.eq.s32.totalorder %v465_v47, %v164_v13  ;;  %193 = vadd.xlane.f32.xlu0 %v183_v11 }
  0xb9   :  { %v180_v1 = vsel %vm172_vm7, 0.9, %v338_v54 }
  0xba   :  { %v188_v14 = vmul.f32 %v180_v1, %v399_v7 }
  0xbc   :  { %197 = vadd.xlane.f32.xlu0 %v185_v2  ;;  %203 = vadd.xlane.f32.xlu1 %v188_v14 }
  0xc0   :  { %201 = vadd.xlane.f32.xlu0 %v187_v5  ;;  %v120_v5 = vadd.s32 48, %v484_v26 }
  0xc2   :  { %vm139_vm15 = vcmp.lt.s32.totalorder %v120_v5, %v490_v37 }
 0x12c   :  { %v71_v0 = vpop.xlane.xlu1 %70 }
 0x12d   :  { %297 = vlog2.f32 %v71_v0 }
 0x130   :  { %v77_v16 = vpop.xlane.xlu1 %76 }
 0x131   :  { %v73_v19 = vpop.xlane.xlu0 %72  ;;  %299 = vlog2.f32 %v77_v16 }
 0x132   :  { %301 = vlog2.f32 %v73_v19 }
 0x134   :  { %v81_v20 = vpop.xlane.xlu1 %80 }
 0x135   :  { %v75_v23 = vpop.xlane.xlu0 %74  ;;  %303 = vlog2.f32 %v81_v20 }
 0x136   :  { %305 = vlog2.f32 %v75_v23 }
 0x137   :  { %v298_v24 = vpop.eup %297 }
 0x138   :  { %v87_v6 = vmul.f32 0.6931472, %v298_v24  ;;  %v85_v25 = vpop.xlane.xlu1 %84 }
 0x139   :  { %v79_v7 = vpop.xlane.xlu0 %78  ;;  %307 = vlog2.f32 %v85_v25 }
 0x13a   :  { %309 = vlog2.f32 %v79_v7  ;;  %v102_v27 = vadd.f32 %v87_v6, %v434_v18 }
 0x13b   :  { %v300_v8 = vpop.eup %299 }
 0x13c   :  { %v302_v30 = vpop.eup %301  ;;  %v93_v31 = vmul.f32 0.6931472, %v300_v8  ;;  %v192_v32 = vpop.xlane.xlu1 %191  ;;  %v205_v42 = vadd.f32 -0.8095017, %v102_v27 }
 0x13d   :  { %v83_v33 = vpop.xlane.xlu0 %82  ;;  %v89_v35 = vmul.f32 0.6931472, %v302_v30 }
 0x13e   :  { %311 = vlog2.f32 %v83_v33  ;;  %v105_v39 = vadd.f32 %v93_v31, %v438_v21 }
 0x13f   :  { %v304_v40 = vpop.eup %303  ;;  %v103_v41 = vadd.f32 %v89_v35, %v440_v22 }
 0x140   :  { %v306_v18 = vpop.eup %305  ;;  %v97_v43 = vmul.f32 0.6931472, %v304_v40  ;;  %v208_v45 = vadd.f32 -0.8095017, %v105_v39  ;;  %v196_v46 = vpop.xlane.xlu1 %195 }
 0x141   :  { %v190_v48 = vpop.xlane.xlu0 %189  ;;  %v91_v49 = vmul.f32 0.6931472, %v306_v18  ;;  %v206_v50 = vadd.f32 -0.8095017, %v103_v41 }
 0x142   :  { %v213_v51 = vsub.f32 %v205_v42, %v190_v48  ;;  %v107_v21 = vadd.f32 %v97_v43, %v448_v28  ;;  %v216_v59 = vsub.f32 %v208_v45, %v196_v46 }
 0x143   :  { %v308_v22 = vpop.eup %307  ;;  %v214_v53 = vsub.f32 %v206_v50, %v192_v32  ;;  %v104_v56 = vadd.f32 %v91_v49, %v432_v17  ;;  %v118_v17 = vadd.s32 32, %v484_v26 }
 0x144   :  { %v221_v54 = vsel %vm133_vm8, %v213_v51, 0.0  ;;  %v310_v57 = vpop.eup %309  ;;  %v101_v58 = vmul.f32 0.6931472, %v308_v22  ;;  %v210_v60 = vadd.f32 -0.8095017, %v107_v21  ;;  %v200_v61 = vpop.xlane.xlu1 %199  ;;  %v224_v2 = vsel %vm136_vm11, %v216_v59, 0.0 }
 0x145   :  { %v194_v62 = vpop.xlane.xlu0 %193  ;;  %v95_v63 = vmul.f32 0.6931472, %v310_v57  ;;  %v222_v4 = vsel %vm134_vm9, %v214_v53, 0.0  ;;  %v207_v28 = vadd.f32 -0.8095017, %v104_v56  ;;  %v230_v10 = vsel %vm229_vm10, %v221_v54, 0.0 }
 0x146   :  { %v231_v9 = vsel %vm229_vm10, %v222_v4, 0.0  ;;  %v109_v3 = vadd.f32 %v101_v58, %v456_v34  ;;  %v218_v14 = vsub.f32 %v210_v60, %v200_v61  ;;  %vm137_vm14 = vcmp.lt.s32.totalorder %v118_v17, %v490_v37 }
 0x147   :  { %v215_v12 = vsub.f32 %v207_v28, %v194_v62  ;;  %v106_v13 = vadd.f32 %v95_v63, %v450_v29  ;;  %v232_v0 = vadd.f32 %v231_v9, %v230_v10  ;;  %v121_v29 = vadd.s32 56, %v484_v26 }
 0x148   :  { %v312_v11 = vpop.eup %311  ;;  %v212_v34 = vadd.f32 -0.8095017, %v109_v3  ;;  %v235_v7 = vsel %vm229_vm10, %v224_v2, 0.0  ;;  %v226_v30 = vsel %vm138_vm13, %v218_v14, 0.0 }
 0x149   :  { %v99_v1 = vmul.f32 0.6931472, %v312_v11  ;;  %v198_v15 = vpop.xlane.xlu0 %197  ;;  %v223_v16 = vsel %vm135_vm12, %v215_v12, 0.0  ;;  %v209_v19 = vadd.f32 -0.8095017, %v106_v13  ;;  %v204_v23 = vpop.xlane.xlu1 %203  ;;  %vm140_vm0 = vcmp.lt.s32.totalorder %v121_v29, %v490_v37 }
 0x14a   :  { %v233_v20 = vsel %vm229_vm10, %v223_v16, 0.0  ;;  %v220_v33 = vsub.f32 %v212_v34, %v204_v23  ;;  %v239_v39 = vsel %vm229_vm10, %v226_v30, 0.0 }
 0x14b   :  { %v108_v24 = vadd.f32 %v99_v1, %v458_v36  ;;  %v234_v6 = vadd.f32 %v233_v20, %v232_v0  ;;  %v217_v25 = vsub.f32 %v209_v19, %v198_v15 }
 0x14c   :  { %v228_v41 = vsel %vm140_vm0, %v220_v33, 0.0 }
 0x14d   :  { %v211_v8 = vadd.f32 -0.8095017, %v108_v24  ;;  %v202_v27 = vpop.xlane.xlu0 %201  ;;  %v236_v31 = vadd.f32 %v235_v7, %v234_v6  ;;  %v225_v32 = vsel %vm137_vm14, %v217_v25, 0.0  ;;  %v243_v44 = vsel %vm229_vm10, %v228_v41, 0.0 }
 0x14e   :  { %v237_v35 = vsel %vm229_vm10, %v225_v32, 0.0 }
 0x14f   :  { %v219_v38 = vsub.f32 %v211_v8, %v202_v27  ;;  %v238_v36 = vadd.f32 %v237_v35, %v236_v31 }
 0x151   :  { %v227_v40 = vsel %vm139_vm15, %v219_v38, 0.0  ;;  %v240_v18 = vadd.f32 %v239_v39, %v238_v36 }
 0x152   :  { %v241_v42 = vsel %vm229_vm10, %v227_v40, 0.0 }
 0x153   :  { %v242_v43 = vadd.f32 %v241_v42, %v240_v18 }
 0x155   :  { %v244_v45 = vadd.f32 %v243_v44, %v242_v43 }
 0x157   :  { %245 = vadd.xlane.f32.xlu0 %v244_v45 }
 0x1e4   :  { %v246_v46 = vpop.xlane.xlu0 %245 }
 0x1e5   :  { %v247_v48 = vrot.slane %v246_v46, 4 }
 0x1e7   :  { %v248_v49 = vadd.f32 %v247_v48, %v246_v46 }
 0x1e9   :  { %v249_v50 = vrot.slane %v248_v49, 2 }
 0x1eb   :  { %v250_v51 = vadd.f32 %v249_v50, %v248_v49 }
 0x1ed   :  { %v251_v37 = vrot.slane %v250_v51, 1 }
 0x1ef   :  { %v252_v52 = vadd.f32 %v251_v37, %v250_v51 }
 0x1f1   :  { %274 = vpush %v252_v52 }
 0x222   :  { %s275_s18 = spop %274 }
 0x223   :  { %v257_v21 = vstv %s275_s18 }
 0x224   :  { %v258_v22 = vsel %vm256_vm3, %v257_v21, 0.0 }
 0x225   :  { %259 = vst [vmem:[#allocation4] sm:$0xff] %v258_v22 }
 0x226   :  { %324 = shalt.err (!%p321_p4)
}
 0x227   :  { %s325_s22 = scalar_lea.hbm %s548_s3, 128 }
 0x228   :  { %p326_p5 = scmp.ne.s32.totalorder %s548_s3, %s325_s22  ;;  %p329_p6 = scmp.lt.u32.totalorder %s325_s22, %s548_s3 }
 0x22a   :  { %p331_p7 = pnand %p329_p6, %p326_p5 }
 0x22c   :  { %334 = shalt.err (!%p331_p7)
}
 0x22d   :  { %269 = dma.vmem_to_hbm [thread:$0]  %s267_s17, 128, %s548_s3, [#allocation5]  }
 0x22e   :  { %335 = dma.done.wait [#allocation5], 128  }
 0x22f   :  { %336 = vsyncadd [#allocation5], 4294967168 }
 0x230   :  { %273 = vsyncpa [#allocation5], 1 }

</bundles_post_ra>
